<compile_context>
chip_gen: v7x
topology: tpu7x:2x2x1
jax: 0.10.0
libtpu: 0.0.40
codegen_flags: <defaults>
</compile_context>

<pallas_src>
import functools

import jax
import jax.numpy as jnp
from jax.experimental import pallas as pl
from jax.experimental.pallas import tpu as pltpu


def _round_up(n, m):
    return ((n + m - 1) // m) * m


# -----------------------------------------------------------------------------
# Parameter packing: fuse the two heads + pack everything into one VMEM slab.
# -----------------------------------------------------------------------------
def pack_params(params):
    """Returns (slab [R,128] f32, layout {name: (row0, rows, cols)})."""
    # Fused head layer 0: [idim, hm + hv]
    wh0 = jnp.concatenate([params["wm0"], params["wv0"]], axis=1)
    bh0 = jnp.concatenate([params["bm0"], params["bv0"]], axis=1)
    # Fused head layer 1: block-diagonal [hm + hv, 2 * out]
    hm, od = params["wm1"].shape
    hv = params["wv1"].shape[0]
    wh1 = jnp.zeros((hm + hv, 2 * od), jnp.float32)
    wh1 = wh1.at[:hm, :od].set(params["wm1"])
    wh1 = wh1.at[hm:, od:].set(params["wv1"])
    bh1 = jnp.concatenate([params["bm1"], params["bv1"]], axis=1)

    mats = {
        "ws0": params["ws0"], "ws1": params["ws1"],
        "wh0": wh0, "wh1": wh1,
        "bs0": params["bs0"], "bs1": params["bs1"],
        "bh0": bh0, "bh1": bh1,
    }

    LANES = 128
    layout = {}
    row = 0
    for name, a in mats.items():
        r, c = a.shape
        assert c <= LANES, f"{name} is wider than one lane tile"
        layout[name] = (row, r, c)
        row += _round_up(r, 8)          # keep every block sublane-aligned
    total_rows = _round_up(row, 8)

    slab = jnp.zeros((total_rows, LANES), jnp.float32)
    for name, a in mats.items():
        r0, r, c = layout[name]
        slab = slab.at[r0:r0 + r, :c].set(a.astype(jnp.float32))
    return slab, layout


# -----------------------------------------------------------------------------
# Kernel
# -----------------------------------------------------------------------------
def encoder_kernel(x_ref, slab_ref, out_ref, *, layout):
    def w(name):
        r0, r, c = layout[name]          # static Python ints -> free slicing
        return slab_ref[r0:r0 + r, :c]

    x = x_ref[...].astype(jnp.float32)

    # ---- share MLP: Linear -> ReLU -> Linear ----
    h = jnp.dot(x, w("ws0"), preferred_element_type=jnp.float32) + w("bs0")
    h = jnp.maximum(h, 0.0)
    h = jnp.dot(h, w("ws1"), preferred_element_type=jnp.float32) + w("bs1")

    # ---- Encoder activation on the shared head (tanh) ----
    com = jnp.tanh(h)

    # ---- fused mean||logvar head: Linear -> ReLU -> block-diag Linear ----
    g = jnp.dot(com, w("wh0"), preferred_element_type=jnp.float32) + w("bh0")
    g = jnp.maximum(g, 0.0)
    out = jnp.dot(g, w("wh1"), preferred_element_type=jnp.float32) + w("bh1")

    out_ref[...] = out.astype(out_ref.dtype)   # cols [0:od]=mu, [od:2od]=logvar


# -----------------------------------------------------------------------------
# Wrapper
# -----------------------------------------------------------------------------
def encoder_forward(x, params, *, block_b=256):
    """x: [B, input_dim] f32. params: dict of [in,out] weights, [1,out] biases."""
    B, in_dim = x.shape
    out_dim = params["wm1"].shape[1]

    slab, layout = pack_params(params)

    # Batch tile: multiple of 8, no larger than the (rounded-up) batch.
    block_b = max(8, min(int(block_b), _round_up(B, 8)))
    block_b = _round_up(block_b, 8)
    grid_n = pl.cdiv(B, block_b)
    b_pad = grid_n * block_b
    if b_pad != B:
        x = jnp.pad(x, ((0, b_pad - B), (0, 0)))

    fused = pl.pallas_call(
        functools.partial(encoder_kernel, layout=layout),
        grid=(grid_n,),
        in_specs=[
            # x streams through, tiled along batch.
            pl.BlockSpec((block_b, in_dim), lambda i: (i, 0)),
            # One weight slab, constant index_map -> resident in VMEM.
            pl.BlockSpec(slab.shape, lambda i: (0, 0)),
        ],
        out_specs=pl.BlockSpec((block_b, 2 * out_dim), lambda i: (i, 0)),
        out_shape=jax.ShapeDtypeStruct((b_pad, 2 * out_dim), jnp.float32),
        compiler_params=pltpu.CompilerParams(
            dimension_semantics=("parallel",),       # megacore on v7x
            vmem_limit_bytes=32 * 1024 * 1024,       # safe on v5e/v6e/v7x
        ),
    )(x, slab)

    mu = fused[:B, :out_dim]
    logvar = fused[:B, out_dim:]
    return mu, logvar


# -----------------------------------------------------------------------------
# Pure-JAX reference (mirrors the PyTorch forward, full f32 precision)
# -----------------------------------------------------------------------------
def encoder_reference(x, p):
    pr = jax.lax.Precision.HIGHEST
    h = jnp.maximum(jnp.dot(x, p["ws0"], precision=pr) + p["bs0"], 0.0)
    h = jnp.dot(h, p["ws1"], precision=pr) + p["bs1"]
    com = jnp.tanh(h)
    m = jnp.maximum(jnp.dot(com, p["wm0"], precision=pr) + p["bm0"], 0.0)
    mu = jnp.dot(m, p["wm1"], precision=pr) + p["bm1"]
    v = jnp.maximum(jnp.dot(com, p["wv0"], precision=pr) + p["bv0"], 0.0)
    lv = jnp.dot(v, p["wv1"], precision=pr) + p["bv1"]
    return mu, lv


def make_params(key, input_dim, share_layer_dims, mean_layer_dims,
                logvar_layer_dims, output_dim):
    """Deterministic synthetic parameters. Weights are [in, out], biases [1, out]."""
    idim = share_layer_dims[-1]
    layer_shapes = {
        "ws0": (input_dim, share_layer_dims[0]),
        "ws1": (share_layer_dims[0], idim),
        "wm0": (idim, mean_layer_dims[0]),
        "wm1": (mean_layer_dims[0], output_dim),
        "wv0": (idim, logvar_layer_dims[0]),
        "wv1": (logvar_layer_dims[0], output_dim),
    }
    params = {}
    keys = jax.random.split(key, len(layer_shapes))
    for (name, shape), k in zip(sorted(layer_shapes.items()), keys):
        fan_in = shape[0]
        scale = 1.0 / jnp.sqrt(jnp.float32(fan_in))
        params[name] = jax.random.uniform(
            k, shape, jnp.float32, minval=-scale, maxval=scale)
        params["b" + name[1:]] = jnp.zeros((1, shape[1]), jnp.float32) + 0.01
    return params


if __name__ == "__main__":
    key = jax.random.PRNGKey(0)
    kx, kp = jax.random.split(key)

    # Small, deterministic config consistent with the module.
    B = 1000                     # non-divisible batch -> exercises cdiv + padding
    input_dim = 32
    output_dim = 8
    share_layer_dims = [64, 32]
    mean_layer_dims = [16]
    logvar_layer_dims = [16]

    x = jax.random.normal(kx, (B, input_dim), jnp.float32)
    params = make_params(kp, input_dim, share_layer_dims, mean_layer_dims,
                         logvar_layer_dims, output_dim)

    mu, logvar = encoder_forward(x, params, block_b=256)   # grid of 4 steps
    mu, logvar = jax.block_until_ready((mu, logvar))

    mu_ref, lv_ref = encoder_reference(x, params)
    assert mu.shape == (B, output_dim) and logvar.shape == (B, output_dim)
    assert jnp.allclose(mu, mu_ref, atol=1e-5, rtol=1e-5)
    assert jnp.allclose(logvar, lv_ref, atol=1e-5, rtol=1e-5)

    print("KERNEL_OK")
</pallas_src>

<mosaic_0001>
module attributes {stable_mosaic.version = 11 : i64} {
  func.func @encoder_kernel(%arg0: i32, %arg1: memref<256x32xf32, #tpu.memory_space<vmem>>, %arg2: memref<192x128xf32, #tpu.memory_space<vmem>>, %arg3: memref<256x16xf32, #tpu.memory_space<vmem>>) attributes {dimension_semantics = [#tpu.dimension_semantics<parallel>], iteration_bounds = array<i64: 4>, scalar_prefetch = 0 : i64, scratch_operands = 0 : i64, tpu.core_type = #tpu.core_type<tc>, window_params = [{transform_indices = @transform_0, window_bounds = array<i64: 256, 32>}, {pipeline_mode = #tpu.pipeline_mode<synchronous>, transform_indices = @transform_1, window_bounds = array<i64: 192, 128>}, {transform_indices = @transform_2, window_bounds = array<i64: 256, 16>}]} {
    %c0 = arith.constant 0 : index
    %c0_0 = arith.constant 0 : index
    %0 = vector.load %arg1[%c0, %c0_0] : memref<256x32xf32, #tpu.memory_space<vmem>>, vector<256x32xf32>
    %c0_1 = arith.constant 0 : index
    %c0_2 = arith.constant 0 : index
    %1 = vector.load %arg2[%c0_1, %c0_2] : memref<192x128xf32, #tpu.memory_space<vmem>>, vector<32x64xf32>
    %cst = arith.constant dense<0.000000e+00> : vector<256x64xf32>
    %2 = tpu.matmul %0, %1, %cst {dimension_numbers = #tpu.dot_dimension_numbers<[1], [0], [0], [1], [0, 0, 1, 1], [], []>} : vector<256x32xf32>, vector<32x64xf32>, vector<256x64xf32> -> vector<256x64xf32>
    %c160 = arith.constant 160 : index
    %c0_3 = arith.constant 0 : index
    %3 = vector.load %arg2[%c160, %c0_3] : memref<192x128xf32, #tpu.memory_space<vmem>>, vector<1x64xf32>
    %4 = vector.broadcast %3 : vector<1x64xf32> to vector<256x64xf32>
    %5 = arith.addf %2, %4 : vector<256x64xf32>
    %cst_4 = arith.constant 0.000000e+00 : f32
    %6 = vector.broadcast %cst_4 : f32 to vector<256x64xf32>
    %7 = arith.maximumf %5, %6 : vector<256x64xf32>
    %c32 = arith.constant 32 : index
    %c0_5 = arith.constant 0 : index
    %8 = vector.load %arg2[%c32, %c0_5] : memref<192x128xf32, #tpu.memory_space<vmem>>, vector<64x32xf32>
    %cst_6 = arith.constant dense<0.000000e+00> : vector<256x32xf32>
    %9 = tpu.matmul %7, %8, %cst_6 {dimension_numbers = #tpu.dot_dimension_numbers<[1], [0], [0], [1], [0, 0, 1, 1], [], []>} : vector<256x64xf32>, vector<64x32xf32>, vector<256x32xf32> -> vector<256x32xf32>
    %c168 = arith.constant 168 : index
    %c0_7 = arith.constant 0 : index
    %10 = vector.load %arg2[%c168, %c0_7] : memref<192x128xf32, #tpu.memory_space<vmem>>, vector<1x32xf32>
    %11 = vector.broadcast %10 : vector<1x32xf32> to vector<256x32xf32>
    %12 = arith.addf %9, %11 : vector<256x32xf32>
    %13 = math.tanh %12 : vector<256x32xf32>
    %c96 = arith.constant 96 : index
    %c0_8 = arith.constant 0 : index
    %14 = vector.load %arg2[%c96, %c0_8] : memref<192x128xf32, #tpu.memory_space<vmem>>, vector<32x32xf32>
    %cst_9 = arith.constant dense<0.000000e+00> : vector<256x32xf32>
    %15 = tpu.matmul %13, %14, %cst_9 {dimension_numbers = #tpu.dot_dimension_numbers<[1], [0], [0], [1], [0, 0, 1, 1], [], []>} : vector<256x32xf32>, vector<32x32xf32>, vector<256x32xf32> -> vector<256x32xf32>
    %c176 = arith.constant 176 : index
    %c0_10 = arith.constant 0 : index
    %16 = vector.load %arg2[%c176, %c0_10] : memref<192x128xf32, #tpu.memory_space<vmem>>, vector<1x32xf32>
    %17 = vector.broadcast %16 : vector<1x32xf32> to vector<256x32xf32>
    %18 = arith.addf %15, %17 : vector<256x32xf32>
    %cst_11 = arith.constant 0.000000e+00 : f32
    %19 = vector.broadcast %cst_11 : f32 to vector<256x32xf32>
    %20 = arith.maximumf %18, %19 : vector<256x32xf32>
    %c128 = arith.constant 128 : index
    %c0_12 = arith.constant 0 : index
    %21 = vector.load %arg2[%c128, %c0_12] : memref<192x128xf32, #tpu.memory_space<vmem>>, vector<32x16xf32>
    %cst_13 = arith.constant dense<0.000000e+00> : vector<256x16xf32>
    %22 = tpu.matmul %20, %21, %cst_13 {dimension_numbers = #tpu.dot_dimension_numbers<[1], [0], [0], [1], [0, 0, 1, 1], [], []>} : vector<256x32xf32>, vector<32x16xf32>, vector<256x16xf32> -> vector<256x16xf32>
    %c184 = arith.constant 184 : index
    %c0_14 = arith.constant 0 : index
    %23 = vector.load %arg2[%c184, %c0_14] : memref<192x128xf32, #tpu.memory_space<vmem>>, vector<1x16xf32>
    %24 = vector.broadcast %23 : vector<1x16xf32> to vector<256x16xf32>
    %25 = arith.addf %22, %24 : vector<256x16xf32>
    %c0_15 = arith.constant 0 : index
    %c0_16 = arith.constant 0 : index
    %26 = vector.load %arg3[%c0_15, %c0_16] : memref<256x16xf32, #tpu.memory_space<vmem>>, vector<256x16xf32>
    tpu.vector_store %arg3[%c0_15, %c0_16], %25 {strides = array<i32>} : memref<256x16xf32, #tpu.memory_space<vmem>>, vector<256x16xf32>,
    return
  }
  func.func @transform_0(%arg0: i32) -> (i32, i32) {
    %c0_i32 = arith.constant 0 : i32
    %c0_i32_0 = arith.constant 0 : i32
    return %arg0, %c0_i32 : i32, i32
  }
  func.func @transform_1(%arg0: i32) -> (i32, i32) {
    %c0_i32 = arith.constant 0 : i32
    %c0_i32_0 = arith.constant 0 : i32
    %c0_i32_1 = arith.constant 0 : i32
    return %c0_i32, %c0_i32_0 : i32, i32
  }
  func.func @transform_2(%arg0: i32) -> (i32, i32) {
    %c0_i32 = arith.constant 0 : i32
    %c0_i32_0 = arith.constant 0 : i32
    return %arg0, %c0_i32 : i32, i32
  }
}

</mosaic_0001>

<bundles_post_ra>
// kernel: tpu_custom_call.1
= control target key start
LH: loop header
LB: loop body
LE: loop exit
PB: predicated region body
PF: predicated region fallthrough
CT: control target
= control target key end

     0   :  { %s2352_s9 = smov 0   ;;  %s2812_s0 = inlined_call_operand.vmem [shape: f32[1024,32], index: 0, kind: input, shape index: {}]   ;;  %s2813_s1 = inlined_call_operand.vmem [shape: f32[192,128], index: 1, kind: input, shape index: {}]   ;;  %s2814_s2 = inlined_call_operand.vmem [shape: f32[1024,16], index: 2, kind: output, shape index: {}]  }
   0x1 LB: > { %s1690_s10 = sadd.s32 4294967295, %s2335_s9   ;;  %p1694_p0 = scmp.ge.s32.totalorder %s2335_s9, 1  ;;  %s2335_s9 = sphi %s2352_s9, %s12_s9  }
   0x2   : > { %p113_p1 = scmp.lt.s32.totalorder %s2335_s9, 5 }
   0x4   : > { %p114_p2 = pnand %p1694_p0, %p113_p1 }
   0x5   : > { %v179_v0 = vld [vmem:[%s2813_s1] sm:$0xff] (!%p114_p2)  ;;  %v180_v1 = vld [vmem:[%s2813_s1 + $0x8] sm:$0xff] (!%p114_p2)  ;;  %v181_v2 = vld [vmem:[%s2813_s1 + $0x10] sm:$0xff] (!%p114_p2)  ;;  %s1695_s17 = sshll.u32 (!%p114_p2), %s1690_s10, 5  ;;  %vm188_vm0 = vcmask (!%p114_p2), 261120   ;;  %vm555_vm1 = vcmask (!%p114_p2), 523264  }
   0x6   : > { %117 = sbr.rel (%p114_p2) target bundleno = 957 (0x3bd), region = 28  ;;  %v2213_v3 = vpack.c.bf16 (!%p114_p2), %v180_v1, %v179_v0  ;;  %v182_v4 = vld [vmem:[%s2813_s1 + $0x18] sm:$0xff] (!%p114_p2)  ;;  %p136_p3 = scmp.lt.s32.totalorder (!%p114_p2), %s1695_s17, 127  ;;  %v542_v5 = vld [vmem:[%s2813_s1 + $0x20] sm:$0xff] (!%p114_p2)  ;;  %v543_v6 = vld [vmem:[%s2813_s1 + $0x28] sm:$0xff] (!%p114_p2)  ;;  %vm1601_vm2 = vcmask (!%p114_p2), 130048  }
   0x7   : > { %v2217_v7 = vpack.c.bf16 (!%p114_p2), %v182_v4, %v181_v2  ;;  %v2221_v8 = vpack.c.bf16 (!%p114_p2), %v543_v6, %v542_v5  ;;  %v544_v9 = vld [vmem:[%s2813_s1 + $0x30] sm:$0xff] (!%p114_p2)  ;;  %v545_v10 = vld [vmem:[%s2813_s1 + $0x38] sm:$0xff] (!%p114_p2)  ;;  %v546_v12 = vld [vmem:[%s2813_s1 + $0x40] sm:$0xff] (!%p114_p2) }
   0x8   : > { %2214 = vmatprep.subr.bf16.mxu0 (!%p114_p2), %v2213_v3  ;;  %v2225_v11 = vpack.c.bf16 (!%p114_p2), %v545_v10, %v544_v9  ;;  %v547_v13 = vld [vmem:[%s2813_s1 + $0x48] sm:$0xff] (!%p114_p2)  ;;  %v548_v47 = vld [vmem:[%s2813_s1 + $0x50] sm:$0xff] (!%p114_p2)  ;;  %v549_v48 = vld [vmem:[%s2813_s1 + $0x58] sm:$0xff] (!%p114_p2) }
   0x9   : > { %2216 = vmatpush3.bf16.msra.mxu0 (!%p114_p2), %v2213_v3  ;;  %2222 = vmatprep.subr.bf16.mxu1 (!%p114_p2), %v2221_v8  ;;  %v2229_v14 = vpack.c.bf16 (!%p114_p2), %v547_v13, %v546_v12  ;;  %v2233_v49 = vpack.c.bf16 (!%p114_p2), %v549_v48, %v548_v47  ;;  %v909_v50 = vld [vmem:[%s2813_s1 + $0x60] sm:$0xff] (!%p114_p2)  ;;  %v910_v51 = vld [vmem:[%s2813_s1 + $0x68] sm:$0xff] (!%p114_p2)  ;;  %v911_v52 = vld [vmem:[%s2813_s1 + $0x70] sm:$0xff] (!%p114_p2) }
   0xa   : > { %2218 = vmatprep.subr.bf16.mxu0 (!%p114_p2), %v2217_v7  ;;  %2224 = vmatpush3.bf16.msra.mxu1 (!%p114_p2), %v2221_v8  ;;  %v2237_v53 = vpack.c.bf16 (!%p114_p2), %v910_v51, %v909_v50  ;;  %v912_v54 = vld [vmem:[%s2813_s1 + $0x78] sm:$0xff] (!%p114_p2)  ;;  %v2485_v56 = vld [vmem:[%s2813_s1 + $0xa0] ss:$0 sm:$0xff] (!%p114_p2) }
   0xb   : > { %2226 = vmatprep.subr.bf16.mxu1 (!%p114_p2), %v2225_v11  ;;  %v2241_v55 = vpack.c.bf16 (!%p114_p2), %v912_v54, %v911_v52 }
   0xd   : > { %s2816_s17 = smov (!%p136_p3, %s1695_s17), 127  ;;  %2220 = vmatpush3.bf16.msra.mxu0 %v2217_v7 }
   0xe   : > { %s1696_s4 = sshll.u32 %s2816_s17, 3  ;;  %2228 = vmatpush3.bf16.msra.mxu1 %v2225_v11  ;;  %2238 = vmatprep.subr.bf16.mxu0 %v2237_v53 }
   0xf   : > { %s2398_s7 = scalar_lea.vmem %s2812_s0, %s1696_s4  ;;  %2230 = vmatprep.subr.bf16.mxu1 %v2229_v14  ;;  %s2711_s14 = scalar_lea.vmem %s2814_s2, %s1696_s4 }
  0x10   : > { %v147_v15 = vld [vmem:[%s2398_s7] sm:$0xff]  ;;  %v148_v16 = vld [vmem:[%s2398_s7 + $0x8] sm:$0xff]  ;;  %v149_v17 = vld [vmem:[%s2398_s7 + $0x10] sm:$0xff] }
  0x11   : > { %1989 = vmatprep.mubr.msk.f32.mxu0 %vm188_vm0, %v147_v15  ;;  %v150_v18 = vld [vmem:[%s2398_s7 + $0x18] sm:$0xff]  ;;  %v151_v19 = vld [vmem:[%s2398_s7 + $0x20] sm:$0xff]  ;;  %v152_v20 = vld [vmem:[%s2398_s7 + $0x28] sm:$0xff] }
  0x12   : > { %1990 = vmatmul.mubr.msk.f32.vlgmr.msra.gmra.mrb[0].mxu0 %vm188_vm0, %v148_v16  ;;  %2232 = vmatpush3.bf16.msra.mxu1 %v2229_v14  ;;  %v153_v21 = vld [vmem:[%s2398_s7 + $0x30] sm:$0xff]  ;;  %v154_v22 = vld [vmem:[%s2398_s7 + $0x38] sm:$0xff]  ;;  %v155_v23 = vld [vmem:[%s2398_s7 + $0x40] sm:$0xff] }
  0x13   : > { %1992 = vmatprep.mubr.msk.f32.mxu0 %vm188_vm0, %v149_v17  ;;  %v156_v24 = vld [vmem:[%s2398_s7 + $0x48] sm:$0xff]  ;;  %v157_v25 = vld [vmem:[%s2398_s7 + $0x50] sm:$0xff]  ;;  %v158_v26 = vld [vmem:[%s2398_s7 + $0x58] sm:$0xff]  ;;  %2234 = vmatprep.subr.bf16.mxu1 %v2233_v49 }
  0x14   : > { %v159_v27 = vld [vmem:[%s2398_s7 + $0x60] sm:$0xff]  ;;  %v160_v28 = vld [vmem:[%s2398_s7 + $0x68] sm:$0xff]  ;;  %v161_v29 = vld [vmem:[%s2398_s7 + $0x70] sm:$0xff]  ;;  %2240 = vmatpush3.bf16.msra.mxu0 %v2237_v53 }
  0x15   : > { %v162_v30 = vld [vmem:[%s2398_s7 + $0x78] sm:$0xff]  ;;  %v163_v31 = vld [vmem:[%s2398_s7 + $0x80] sm:$0xff]  ;;  %v164_v32 = vld [vmem:[%s2398_s7 + $0x88] sm:$0xff]  ;;  %2242 = vmatprep.subr.bf16.mxu0 %v2241_v55 }
  0x16   : > { %1993 = vmatmul.mubr.msk.f32.gmra.mrb[2].mxu0 %vm188_vm0, %v150_v18  ;;  %v165_v33 = vld [vmem:[%s2398_s7 + $0x90] sm:$0xff]  ;;  %v166_v34 = vld [vmem:[%s2398_s7 + $0x98] sm:$0xff]  ;;  %v167_v35 = vld [vmem:[%s2398_s7 + $0xa0] sm:$0xff]  ;;  %2236 = vmatpush3.bf16.msra.mxu1 %v2233_v49 }
  0x17   : > { %1995 = vmatprep.mubr.msk.f32.mxu0 %vm188_vm0, %v151_v19  ;;  %v168_v36 = vld [vmem:[%s2398_s7 + $0xa8] sm:$0xff]  ;;  %v169_v37 = vld [vmem:[%s2398_s7 + $0xb0] sm:$0xff]  ;;  %v170_v38 = vld [vmem:[%s2398_s7 + $0xb8] sm:$0xff] }
  0x18   : > { %v171_v39 = vld [vmem:[%s2398_s7 + $0xc0] sm:$0xff]  ;;  %v172_v40 = vld [vmem:[%s2398_s7 + $0xc8] sm:$0xff]  ;;  %v173_v41 = vld [vmem:[%s2398_s7 + $0xd0] sm:$0xff]  ;;  %2244 = vmatpush3.bf16.msra.mxu0 %v2241_v55 }
  0x19   : > { %v174_v42 = vld [vmem:[%s2398_s7 + $0xd8] sm:$0xff]  ;;  %v175_v43 = vld [vmem:[%s2398_s7 + $0xe0] sm:$0xff]  ;;  %v176_v44 = vld [vmem:[%s2398_s7 + $0xe8] sm:$0xff] }
  0x1a   : > { %1996 = vmatmul.mubr.msk.f32.gmra.mrb[4].mxu0 %vm188_vm0, %v152_v20  ;;  %v177_v45 = vld [vmem:[%s2398_s7 + $0xf0] sm:$0xff]  ;;  %v178_v46 = vld [vmem:[%s2398_s7 + $0xf8] sm:$0xff] }
  0x1b   : > { %1998 = vmatprep.mubr.msk.f32.mxu0 %vm188_vm0, %v153_v21 }
  0x1e   : > { %1999 = vmatmul.mubr.msk.f32.gmra.mrb[6].mxu0 %vm188_vm0, %v154_v22 }
  0x1f   : > { %2001 = vmatprep.mubr.msk.f32.mxu0 %vm188_vm0, %v155_v23 }
  0x22   : > { %2002 = vmatmul.mubr.msk.f32.gmra.mrb[8].mxu0 %vm188_vm0, %v156_v24 }
  0x23   : > { %2004 = vmatprep.mubr.msk.f32.mxu0 %vm188_vm0, %v157_v25 }
  0x26   : > { %2005 = vmatmul.mubr.msk.f32.gmra.mrb[10].mxu0 %vm188_vm0, %v158_v26 }
  0x27   : > { %2007 = vmatprep.mubr.msk.f32.mxu0 %vm188_vm0, %v159_v27 }
  0x2a   : > { %2008 = vmatmul.mubr.msk.f32.gmra.mrb[12].mxu0 %vm188_vm0, %v160_v28 }
  0x2b   : > { %2010 = vmatprep.mubr.msk.f32.mxu0 %vm188_vm0, %v161_v29 }
  0x2e   : > { %2011 = vmatmul.mubr.msk.f32.gmra.mrb[14].mxu0 %vm188_vm0, %v162_v30 }
  0x2f   : > { %2013 = vmatprep.mubr.msk.f32.mxu0 %vm188_vm0, %v163_v31 }
  0x32   : > { %2014 = vmatmul.mubr.msk.f32.gmra.mrb[16].mxu0 %vm188_vm0, %v164_v32 }
  0x33   : > { %2016 = vmatprep.mubr.msk.f32.mxu0 %vm188_vm0, %v165_v33 }
  0x36   : > { %2017 = vmatmul.mubr.msk.f32.gmra.mrb[18].mxu0 %vm188_vm0, %v166_v34 }
  0x37   : > { %2019 = vmatprep.mubr.msk.f32.mxu0 %vm188_vm0, %v167_v35 }
  0x3a   : > { %2020 = vmatmul.mubr.msk.f32.gmra.mrb[20].mxu0 %vm188_vm0, %v168_v36 }
  0x3b   : > { %2022 = vmatprep.mubr.msk.f32.mxu0 %vm188_vm0, %v169_v37 }
  0x3e   : > { %2023 = vmatmul.mubr.msk.f32.gmra.mrb[22].mxu0 %vm188_vm0, %v170_v38 }
  0x3f   : > { %2025 = vmatprep.mubr.msk.f32.mxu0 %vm188_vm0, %v171_v39 }
  0x42   : > { %2026 = vmatmul.mubr.msk.f32.gmra.mrb[24].mxu0 %vm188_vm0, %v172_v40 }
  0x43   : > { %2028 = vmatprep.mubr.msk.f32.mxu0 %vm188_vm0, %v173_v41 }
  0x46   : > { %2029 = vmatmul.mubr.msk.f32.gmra.mrb[26].mxu0 %vm188_vm0, %v174_v42 }
  0x47   : > { %2031 = vmatprep.mubr.msk.f32.mxu0 %vm188_vm0, %v175_v43 }
  0x4a   : > { %2032 = vmatmul.mubr.msk.f32.gmra.mrb[28].mxu0 %vm188_vm0, %v176_v44 }
  0x4b   : > { %2034 = vmatprep.mubr.msk.f32.mxu0 %vm188_vm0, %v177_v45 }
  0x4e   : > { %2035 = vmatmul.mubr.msk.f32.gmra.mrb[30].mxu0 %vm188_vm0, %v178_v46 }
  0xe5   : > { %v1991_v57 = vpop.f32.mrb[0].mxu0 }
  0xe6   : > { %v357_v58 = vadd.f32 %v1991_v57, %v2485_v56  ;;  %v351_v59 = vpop.f32.mrb[1].mxu0 }
  0xe7   : > { %v352_v60 = vadd.f32 %v2485_v56, %v351_v59 }
  0xe8   : > { %v511_v63 = vmax.f32 %v357_v58, 0.0 }
  0xe9   : > { %v510_v61 = vmax.f32 %v352_v60, 0.0  ;;  %v1994_v62 = vpop.f32.mrb[2].mxu0 }
  0xea   : > { %v367_v0 = vadd.f32 %v1994_v62, %v2485_v56  ;;  %v361_v1 = vpop.f32.mrb[3].mxu0 }
  0xeb   : > { %v362_v2 = vadd.f32 %v2485_v56, %v361_v1  ;;  %2053 = vmatprep.mubr.msk.f32.mxu1 %vm555_vm1, %v510_v61 }
  0xec   : > { %2054 = vmatmul.mubr.msk.f32.vlgmr.msra.gmra.mrb[0].mxu1 %vm555_vm1, %v511_v63  ;;  %v513_v5 = vmax.f32 %v367_v0, 0.0 }
  0xed   : > { %v512_v3 = vmax.f32 %v362_v2, 0.0  ;;  %v1997_v4 = vpop.f32.mrb[4].mxu0 }
  0xee   : > { %v377_v6 = vadd.f32 %v1997_v4, %v2485_v56  ;;  %v371_v7 = vpop.f32.mrb[5].mxu0 }
  0xef   : > { %v372_v8 = vadd.f32 %v2485_v56, %v371_v7  ;;  %2056 = vmatprep.mubr.msk.f32.mxu1 %vm555_vm1, %v512_v3 }
  0xf0   : > { %2057 = vmatmul.mubr.msk.f32.gmra.mrb[2].mxu1 %vm555_vm1, %v513_v5  ;;  %v515_v11 = vmax.f32 %v377_v6, 0.0 }
  0xf1   : > { %v514_v9 = vmax.f32 %v372_v8, 0.0  ;;  %v2000_v10 = vpop.f32.mrb[6].mxu0 }
  0xf2   : > { %v387_v12 = vadd.f32 %v2000_v10, %v2485_v56  ;;  %v381_v13 = vpop.f32.mrb[7].mxu0 }
  0xf3   : > { %v382_v14 = vadd.f32 %v2485_v56, %v381_v13  ;;  %2059 = vmatprep.mubr.msk.f32.mxu1 %vm555_vm1, %v514_v9 }
  0xf4   : > { %2060 = vmatmul.mubr.msk.f32.gmra.mrb[4].mxu1 %vm555_vm1, %v515_v11  ;;  %v517_v17 = vmax.f32 %v387_v12, 0.0 }
  0xf5   : > { %v516_v15 = vmax.f32 %v382_v14, 0.0  ;;  %v2003_v16 = vpop.f32.mrb[8].mxu0 }
  0xf6   : > { %v397_v18 = vadd.f32 %v2003_v16, %v2485_v56  ;;  %v391_v19 = vpop.f32.mrb[9].mxu0 }
  0xf7   : > { %v392_v20 = vadd.f32 %v2485_v56, %v391_v19  ;;  %2062 = vmatprep.mubr.msk.f32.mxu1 %vm555_vm1, %v516_v15 }
  0xf8   : > { %2063 = vmatmul.mubr.msk.f32.gmra.mrb[6].mxu1 %vm555_vm1, %v517_v17  ;;  %v519_v23 = vmax.f32 %v397_v18, 0.0 }
  0xf9   : > { %v518_v21 = vmax.f32 %v392_v20, 0.0  ;;  %v2006_v22 = vpop.f32.mrb[10].mxu0 }
  0xfa   : > { %v407_v24 = vadd.f32 %v2006_v22, %v2485_v56  ;;  %v401_v25 = vpop.f32.mrb[11].mxu0 }
  0xfb   : > { %v402_v26 = vadd.f32 %v2485_v56, %v401_v25  ;;  %2065 = vmatprep.mubr.msk.f32.mxu1 %vm555_vm1, %v518_v21 }
  0xfc   : > { %2066 = vmatmul.mubr.msk.f32.gmra.mrb[8].mxu1 %vm555_vm1, %v519_v23  ;;  %v521_v29 = vmax.f32 %v407_v24, 0.0 }
  0xfd   : > { %v520_v27 = vmax.f32 %v402_v26, 0.0  ;;  %v2009_v28 = vpop.f32.mrb[12].mxu0  ;;  %v1271_v26 = vld [vmem:[%s2813_s1 + $0x80] sm:$0xff] }
  0xfe   : > { %v417_v30 = vadd.f32 %v2009_v28, %v2485_v56  ;;  %v411_v31 = vpop.f32.mrb[13].mxu0 }
  0xff   : > { %v412_v32 = vadd.f32 %v2485_v56, %v411_v31  ;;  %2068 = vmatprep.mubr.msk.f32.mxu1 %vm555_vm1, %v520_v27  ;;  %v1272_v27 = vld [vmem:[%s2813_s1 + $0x88] sm:$0xff] }
 0x100   : > { %2069 = vmatmul.mubr.msk.f32.gmra.mrb[10].mxu1 %vm555_vm1, %v521_v29  ;;  %v523_v35 = vmax.f32 %v417_v30, 0.0  ;;  %v2245_v28 = vpack.c.bf16 %v1272_v27, %v1271_v26  ;;  %v1274_v29 = vld [vmem:[%s2813_s1 + $0x98] sm:$0xff]  ;;  %v2566_v31 = vld [vmem:[%s2813_s1 + $0xa8] ss:$0 sm:$0xff] }
 0x101   : > { %v522_v33 = vmax.f32 %v412_v32, 0.0  ;;  %v2012_v34 = vpop.f32.mrb[14].mxu0 }
 0x102   : > { %v427_v36 = vadd.f32 %v2012_v34, %v2485_v56  ;;  %v421_v37 = vpop.f32.mrb[15].mxu0  ;;  %2253 = vmatprep.subr.bf16.mxu1 %v2245_v28  ;;  %2246 = vmatprep.subr.bf16.mxu0 %v2245_v28 }
 0x103   : > { %v422_v38 = vadd.f32 %v2485_v56, %v421_v37  ;;  %2071 = vmatprep.mubr.msk.f32.mxu1 %vm555_vm1, %v522_v33  ;;  %2255 = vmatpush3.bf16.msra.mxu1 %v2245_v28 }
 0x104   : > { %2072 = vmatmul.mubr.msk.f32.gmra.mrb[12].mxu1 %vm555_vm1, %v523_v35  ;;  %v525_v41 = vmax.f32 %v427_v36, 0.0 }
 0x105   : > { %v524_v39 = vmax.f32 %v422_v38, 0.0  ;;  %v2015_v40 = vpop.f32.mrb[16].mxu0 }
 0x106   : > { %v437_v42 = vadd.f32 %v2015_v40, %v2485_v56  ;;  %v431_v43 = vpop.f32.mrb[17].mxu0 }
 0x107   : > { %v432_v44 = vadd.f32 %v2485_v56, %v431_v43  ;;  %2074 = vmatprep.mubr.msk.f32.mxu1 %vm555_vm1, %v524_v39 }
 0x108   : > { %2075 = vmatmul.mubr.msk.f32.gmra.mrb[14].mxu1 %vm555_vm1, %v525_v41  ;;  %v527_v47 = vmax.f32 %v437_v42, 0.0 }
 0x109   : > { %v526_v45 = vmax.f32 %v432_v44, 0.0  ;;  %v2018_v46 = vpop.f32.mrb[18].mxu0 }
 0x10a   : > { %v447_v48 = vadd.f32 %v2018_v46, %v2485_v56  ;;  %v441_v49 = vpop.f32.mrb[19].mxu0 }
 0x10b   : > { %v442_v50 = vadd.f32 %v2485_v56, %v441_v49  ;;  %2077 = vmatprep.mubr.msk.f32.mxu1 %vm555_vm1, %v526_v45 }
 0x10c   : > { %2078 = vmatmul.mubr.msk.f32.gmra.mrb[16].mxu1 %vm555_vm1, %v527_v47  ;;  %v529_v53 = vmax.f32 %v447_v48, 0.0 }
 0x10d   : > { %v528_v51 = vmax.f32 %v442_v50, 0.0  ;;  %v2021_v52 = vpop.f32.mrb[20].mxu0 }
 0x10e   : > { %v457_v54 = vadd.f32 %v2021_v52, %v2485_v56  ;;  %v451_v55 = vpop.f32.mrb[21].mxu0 }
 0x10f   : > { %v452_v57 = vadd.f32 %v2485_v56, %v451_v55  ;;  %2080 = vmatprep.mubr.msk.f32.mxu1 %vm555_vm1, %v528_v51 }
 0x110   : > { %2081 = vmatmul.mubr.msk.f32.gmra.mrb[18].mxu1 %vm555_vm1, %v529_v53  ;;  %v531_v60 = vmax.f32 %v457_v54, 0.0 }
 0x111   : > { %v530_v58 = vmax.f32 %v452_v57, 0.0  ;;  %v2024_v59 = vpop.f32.mrb[22].mxu0 }
 0x112   : > { %v467_v61 = vadd.f32 %v2024_v59, %v2485_v56  ;;  %v461_v62 = vpop.f32.mrb[23].mxu0 }
 0x113   : > { %v462_v63 = vadd.f32 %v2485_v56, %v461_v62  ;;  %2083 = vmatprep.mubr.msk.f32.mxu1 %vm555_vm1, %v530_v58 }
 0x114   : > { %2084 = vmatmul.mubr.msk.f32.gmra.mrb[20].mxu1 %vm555_vm1, %v531_v60  ;;  %v533_v2 = vmax.f32 %v467_v61, 0.0 }
 0x115   : > { %v532_v0 = vmax.f32 %v462_v63, 0.0  ;;  %v2027_v1 = vpop.f32.mrb[24].mxu0 }
 0x116   : > { %v477_v3 = vadd.f32 %v2027_v1, %v2485_v56  ;;  %v471_v4 = vpop.f32.mrb[25].mxu0 }
 0x117   : > { %v472_v5 = vadd.f32 %v2485_v56, %v471_v4  ;;  %2086 = vmatprep.mubr.msk.f32.mxu1 %vm555_vm1, %v532_v0 }
 0x118   : > { %2087 = vmatmul.mubr.msk.f32.gmra.mrb[22].mxu1 %vm555_vm1, %v533_v2  ;;  %v535_v8 = vmax.f32 %v477_v3, 0.0 }
 0x119   : > { %v534_v6 = vmax.f32 %v472_v5, 0.0  ;;  %v2030_v7 = vpop.f32.mrb[26].mxu0 }
 0x11a   : > { %v487_v9 = vadd.f32 %v2030_v7, %v2485_v56  ;;  %v481_v10 = vpop.f32.mrb[27].mxu0 }
 0x11b   : > { %v482_v11 = vadd.f32 %v2485_v56, %v481_v10  ;;  %2089 = vmatprep.mubr.msk.f32.mxu1 %vm555_vm1, %v534_v6 }
 0x11c   : > { %2090 = vmatmul.mubr.msk.f32.gmra.mrb[24].mxu1 %vm555_vm1, %v535_v8  ;;  %v537_v14 = vmax.f32 %v487_v9, 0.0 }
 0x11d   : > { %v536_v12 = vmax.f32 %v482_v11, 0.0  ;;  %v2033_v13 = vpop.f32.mrb[28].mxu0 }
 0x11e   : > { %v497_v15 = vadd.f32 %v2033_v13, %v2485_v56  ;;  %v491_v16 = vpop.f32.mrb[29].mxu0 }
 0x11f   : > { %v492_v17 = vadd.f32 %v2485_v56, %v491_v16  ;;  %2092 = vmatprep.mubr.msk.f32.mxu1 %vm555_vm1, %v536_v12 }
 0x120   : > { %2093 = vmatmul.mubr.msk.f32.gmra.mrb[26].mxu1 %vm555_vm1, %v537_v14  ;;  %v539_v20 = vmax.f32 %v497_v15, 0.0 }
 0x121   : > { %v538_v18 = vmax.f32 %v492_v17, 0.0  ;;  %v2036_v19 = vpop.f32.mrb[30].mxu0 }
 0x122   : > { %v507_v21 = vadd.f32 %v2036_v19, %v2485_v56  ;;  %v501_v22 = vpop.f32.mrb[31].mxu0 }
 0x123   : > { %v502_v23 = vadd.f32 %v2485_v56, %v501_v22  ;;  %2095 = vmatprep.mubr.msk.f32.mxu1 %vm555_vm1, %v538_v18  ;;  %v1273_v56 = vld [vmem:[%s2813_s1 + $0x90] sm:$0xff] }
 0x124   : > { %2096 = vmatmul.mubr.msk.f32.gmra.mrb[28].mxu1 %vm555_vm1, %v539_v20  ;;  %v541_v25 = vmax.f32 %v507_v21, 0.0  ;;  %v2249_v30 = vpack.c.bf16 %v1274_v29, %v1273_v56 }
 0x125   : > { %v540_v24 = vmax.f32 %v502_v23, 0.0 }
 0x126   : > { %2254 = vmatprep.subr.bf16.mxu1 %v2249_v30 }
 0x127   : > { %2098 = vmatprep.mubr.msk.f32.mxu1 %vm555_vm1, %v540_v24  ;;  %2256 = vmatpush3.bf16.msra.mxu1 %v2249_v30 }
 0x128   : > { %2099 = vmatmul.mubr.msk.f32.gmra.mrb[30].mxu1 %vm555_vm1, %v541_v25 }
 0x1bf   : > { %v2055_v32 = vpop.f32.mrb[0].mxu1 }
 0x1c0   : > { %v724_v33 = vadd.f32 %v2055_v32, %v2566_v31  ;;  %v718_v34 = vpop.f32.mrb[1].mxu1 }
 0x1c1   : > { %v719_v35 = vadd.f32 %v2566_v31, %v718_v34 }
 0x1c3   : > { %2265 = vtanh.f32 %v719_v35  ;;  %v2058_v36 = vpop.f32.mrb[2].mxu1 }
 0x1c4   : > { %2267 = vtanh.f32 %v724_v33  ;;  %v734_v37 = vadd.f32 %v2058_v36, %v2566_v31  ;;  %v728_v38 = vpop.f32.mrb[3].mxu1 }
 0x1c5   : > { %v729_v39 = vadd.f32 %v2566_v31, %v728_v38 }
 0x1c7   : > { %2269 = vtanh.f32 %v729_v39  ;;  %v2061_v40 = vpop.f32.mrb[4].mxu1 }
 0x1c8   : > { %2271 = vtanh.f32 %v734_v37  ;;  %v744_v41 = vadd.f32 %v2061_v40, %v2566_v31  ;;  %v738_v42 = vpop.f32.mrb[5].mxu1 }
 0x1c9   : > { %v739_v43 = vadd.f32 %v2566_v31, %v738_v42 }
 0x1cb   : > { %2273 = vtanh.f32 %v739_v43  ;;  %v2064_v44 = vpop.f32.mrb[6].mxu1 }
 0x1cc   : > { %2275 = vtanh.f32 %v744_v41  ;;  %v754_v45 = vadd.f32 %v2064_v44, %v2566_v31  ;;  %v748_v46 = vpop.f32.mrb[7].mxu1 }
 0x1cd   : > { %v2266_v47 = vpop.eup %2265  ;;  %v749_v48 = vadd.f32 %v2566_v31, %v748_v46 }
 0x1ce   : > { %v2268_v49 = vpop.eup %2267  ;;  %2109 = vmatprep.mubr.msk.f32.mxu0 %vm188_vm0, %v2266_v47 }
 0x1cf   : > { %2277 = vtanh.f32 %v749_v48  ;;  %v2067_v50 = vpop.f32.mrb[8].mxu1  ;;  %2110 = vmatmul.mubr.msk.f32.vlgmr.msra.gmra.mrb[32].mxu0 %vm188_vm0, %v2268_v49 }
 0x1d0   : > { %2279 = vtanh.f32 %v754_v45  ;;  %v764_v51 = vadd.f32 %v2067_v50, %v2566_v31  ;;  %v758_v52 = vpop.f32.mrb[9].mxu1  ;;  %2248 = vmatpush3.bf16.msra.mxu0 %v2245_v28 }
 0x1d1   : > { %v2270_v53 = vpop.eup %2269  ;;  %v759_v54 = vadd.f32 %v2566_v31, %v758_v52  ;;  %2250 = vmatprep.subr.bf16.mxu0 %v2249_v30 }
 0x1d2   : > { %v2272_v55 = vpop.eup %2271  ;;  %2112 = vmatprep.mubr.msk.f32.mxu0 %vm188_vm0, %v2270_v53 }
 0x1d3   : > { %2281 = vtanh.f32 %v759_v54  ;;  %v2070_v57 = vpop.f32.mrb[10].mxu1  ;;  %2113 = vmatmul.mubr.msk.f32.gmra.mrb[34].mxu0 %vm188_vm0, %v2272_v55 }
 0x1d4   : > { %2283 = vtanh.f32 %v764_v51  ;;  %v774_v58 = vadd.f32 %v2070_v57, %v2566_v31  ;;  %v768_v59 = vpop.f32.mrb[11].mxu1  ;;  %2252 = vmatpush3.bf16.msra.mxu0 %v2249_v30 }
 0x1d5   : > { %v2274_v60 = vpop.eup %2273  ;;  %v769_v61 = vadd.f32 %v2566_v31, %v768_v59 }
 0x1d6   : > { %v2276_v62 = vpop.eup %2275  ;;  %2115 = vmatprep.mubr.msk.f32.mxu0 %vm188_vm0, %v2274_v60 }
 0x1d7   : > { %2285 = vtanh.f32 %v769_v61  ;;  %v2073_v63 = vpop.f32.mrb[12].mxu1  ;;  %2116 = vmatmul.mubr.msk.f32.gmra.mrb[36].mxu0 %vm188_vm0, %v2276_v62 }
 0x1d8   : > { %2287 = vtanh.f32 %v774_v58  ;;  %v784_v0 = vadd.f32 %v2073_v63, %v2566_v31  ;;  %v778_v1 = vpop.f32.mrb[13].mxu1 }
 0x1d9   : > { %v2278_v2 = vpop.eup %2277  ;;  %v779_v3 = vadd.f32 %v2566_v31, %v778_v1  ;;  %v2635_v1 = vld [vmem:[%s2813_s1 + $0xb0] ss:$0 sm:$0xff] }
 0x1da   : > { %v2280_v4 = vpop.eup %2279  ;;  %2118 = vmatprep.mubr.msk.f32.mxu0 %vm188_vm0, %v2278_v2 }
 0x1db   : > { %2289 = vtanh.f32 %v779_v3  ;;  %v2076_v5 = vpop.f32.mrb[14].mxu1  ;;  %2119 = vmatmul.mubr.msk.f32.gmra.mrb[38].mxu0 %vm188_vm0, %v2280_v4 }
 0x1dc   : > { %2291 = vtanh.f32 %v784_v0  ;;  %v794_v6 = vadd.f32 %v2076_v5, %v2566_v31  ;;  %v788_v7 = vpop.f32.mrb[15].mxu1 }
 0x1dd   : > { %v2282_v8 = vpop.eup %2281  ;;  %v789_v9 = vadd.f32 %v2566_v31, %v788_v7 }
 0x1de   : > { %v2284_v10 = vpop.eup %2283  ;;  %2121 = vmatprep.mubr.msk.f32.mxu0 %vm188_vm0, %v2282_v8 }
 0x1df   : > { %2293 = vtanh.f32 %v789_v9  ;;  %v2079_v11 = vpop.f32.mrb[16].mxu1  ;;  %2122 = vmatmul.mubr.msk.f32.gmra.mrb[40].mxu0 %vm188_vm0, %v2284_v10 }
 0x1e0   : > { %2295 = vtanh.f32 %v794_v6  ;;  %v804_v12 = vadd.f32 %v2079_v11, %v2566_v31  ;;  %v798_v13 = vpop.f32.mrb[17].mxu1 }
 0x1e1   : > { %v2286_v14 = vpop.eup %2285  ;;  %v799_v15 = vadd.f32 %v2566_v31, %v798_v13 }
 0x1e2   : > { %v2288_v16 = vpop.eup %2287  ;;  %2124 = vmatprep.mubr.msk.f32.mxu0 %vm188_vm0, %v2286_v14 }
 0x1e3   : > { %2297 = vtanh.f32 %v799_v15  ;;  %v2082_v17 = vpop.f32.mrb[18].mxu1  ;;  %2125 = vmatmul.mubr.msk.f32.gmra.mrb[42].mxu0 %vm188_vm0, %v2288_v16 }
 0x1e4   : > { %2299 = vtanh.f32 %v804_v12  ;;  %v814_v18 = vadd.f32 %v2082_v17, %v2566_v31  ;;  %v808_v19 = vpop.f32.mrb[19].mxu1 }
 0x1e5   : > { %v2290_v20 = vpop.eup %2289  ;;  %v809_v21 = vadd.f32 %v2566_v31, %v808_v19 }
 0x1e6   : > { %v2292_v22 = vpop.eup %2291  ;;  %2127 = vmatprep.mubr.msk.f32.mxu0 %vm188_vm0, %v2290_v20 }
 0x1e7   : > { %2301 = vtanh.f32 %v809_v21  ;;  %v2085_v23 = vpop.f32.mrb[20].mxu1  ;;  %2128 = vmatmul.mubr.msk.f32.gmra.mrb[44].mxu0 %vm188_vm0, %v2292_v22 }
 0x1e8   : > { %2303 = vtanh.f32 %v814_v18  ;;  %v824_v24 = vadd.f32 %v2085_v23, %v2566_v31  ;;  %v818_v25 = vpop.f32.mrb[21].mxu1 }
 0x1e9   : > { %v2294_v26 = vpop.eup %2293  ;;  %v819_v27 = vadd.f32 %v2566_v31, %v818_v25 }
 0x1ea   : > { %v2296_v56 = vpop.eup %2295  ;;  %2130 = vmatprep.mubr.msk.f32.mxu0 %vm188_vm0, %v2294_v26 }
 0x1eb   : > { %2305 = vtanh.f32 %v819_v27  ;;  %v2088_v28 = vpop.f32.mrb[22].mxu1  ;;  %2131 = vmatmul.mubr.msk.f32.gmra.mrb[46].mxu0 %vm188_vm0, %v2296_v56 }
 0x1ec   : > { %2307 = vtanh.f32 %v824_v24  ;;  %v834_v29 = vadd.f32 %v2088_v28, %v2566_v31  ;;  %v828_v30 = vpop.f32.mrb[23].mxu1 }
 0x1ed   : > { %v2298_v32 = vpop.eup %2297  ;;  %v829_v33 = vadd.f32 %v2566_v31, %v828_v30 }
 0x1ee   : > { %v2300_v34 = vpop.eup %2299  ;;  %2133 = vmatprep.mubr.msk.f32.mxu0 %vm188_vm0, %v2298_v32 }
 0x1ef   : > { %2309 = vtanh.f32 %v829_v33  ;;  %v2091_v35 = vpop.f32.mrb[24].mxu1  ;;  %2134 = vmatmul.mubr.msk.f32.gmra.mrb[48].mxu0 %vm188_vm0, %v2300_v34 }
 0x1f0   : > { %2311 = vtanh.f32 %v834_v29  ;;  %v844_v36 = vadd.f32 %v2091_v35, %v2566_v31  ;;  %v838_v37 = vpop.f32.mrb[25].mxu1 }
 0x1f1   : > { %v2302_v38 = vpop.eup %2301  ;;  %v839_v39 = vadd.f32 %v2566_v31, %v838_v37 }
 0x1f2   : > { %v2304_v40 = vpop.eup %2303  ;;  %2136 = vmatprep.mubr.msk.f32.mxu0 %vm188_vm0, %v2302_v38 }
 0x1f3   : > { %2313 = vtanh.f32 %v839_v39  ;;  %v2094_v41 = vpop.f32.mrb[26].mxu1  ;;  %2137 = vmatmul.mubr.msk.f32.gmra.mrb[50].mxu0 %vm188_vm0, %v2304_v40 }
 0x1f4   : > { %2315 = vtanh.f32 %v844_v36  ;;  %v854_v42 = vadd.f32 %v2094_v41, %v2566_v31  ;;  %v848_v43 = vpop.f32.mrb[27].mxu1 }
 0x1f5   : > { %v2306_v44 = vpop.eup %2305  ;;  %v849_v45 = vadd.f32 %v2566_v31, %v848_v43 }
 0x1f6   : > { %v2308_v46 = vpop.eup %2307  ;;  %2139 = vmatprep.mubr.msk.f32.mxu0 %vm188_vm0, %v2306_v44 }
 0x1f7   : > { %2317 = vtanh.f32 %v849_v45  ;;  %v2097_v47 = vpop.f32.mrb[28].mxu1  ;;  %2140 = vmatmul.mubr.msk.f32.gmra.mrb[52].mxu0 %vm188_vm0, %v2308_v46 }
 0x1f8   : > { %2319 = vtanh.f32 %v854_v42  ;;  %v864_v48 = vadd.f32 %v2097_v47, %v2566_v31  ;;  %v858_v49 = vpop.f32.mrb[29].mxu1 }
 0x1f9   : > { %v2310_v50 = vpop.eup %2309  ;;  %v859_v51 = vadd.f32 %v2566_v31, %v858_v49 }
 0x1fa   : > { %v2312_v52 = vpop.eup %2311  ;;  %2142 = vmatprep.mubr.msk.f32.mxu0 %vm188_vm0, %v2310_v50 }
 0x1fb   : > { %2321 = vtanh.f32 %v859_v51  ;;  %v2100_v53 = vpop.f32.mrb[30].mxu1  ;;  %2143 = vmatmul.mubr.msk.f32.gmra.mrb[54].mxu0 %vm188_vm0, %v2312_v52 }
 0x1fc   : > { %2323 = vtanh.f32 %v864_v48  ;;  %v874_v54 = vadd.f32 %v2100_v53, %v2566_v31  ;;  %v868_v55 = vpop.f32.mrb[31].mxu1 }
 0x1fd   : > { %v2314_v57 = vpop.eup %2313  ;;  %v869_v58 = vadd.f32 %v2566_v31, %v868_v55 }
 0x1fe   : > { %v2316_v59 = vpop.eup %2315  ;;  %2145 = vmatprep.mubr.msk.f32.mxu0 %vm188_vm0, %v2314_v57 }
 0x1ff   : > { %2325 = vtanh.f32 %v869_v58  ;;  %2146 = vmatmul.mubr.msk.f32.gmra.mrb[56].mxu0 %vm188_vm0, %v2316_v59 }
 0x200   : > { %2327 = vtanh.f32 %v874_v54 }
 0x201   : > { %v2318_v60 = vpop.eup %2317 }
 0x202   : > { %v2320_v61 = vpop.eup %2319  ;;  %2148 = vmatprep.mubr.msk.f32.mxu0 %vm188_vm0, %v2318_v60 }
 0x203   : > { %2149 = vmatmul.mubr.msk.f32.gmra.mrb[58].mxu0 %vm188_vm0, %v2320_v61 }
 0x205   : > { %v2322_v62 = vpop.eup %2321 }
 0x206   : > { %v2324_v63 = vpop.eup %2323  ;;  %2151 = vmatprep.mubr.msk.f32.mxu0 %vm188_vm0, %v2322_v62 }
 0x207   : > { %2152 = vmatmul.mubr.msk.f32.gmra.mrb[60].mxu0 %vm188_vm0, %v2324_v63 }
 0x209   : > { %v2326_v31 = vpop.eup %2325 }
 0x20a   : > { %v2328_v0 = vpop.eup %2327  ;;  %2154 = vmatprep.mubr.msk.f32.mxu0 %vm188_vm0, %v2326_v31 }
 0x20b   : > { %2155 = vmatmul.mubr.msk.f32.gmra.mrb[62].mxu0 %vm188_vm0, %v2328_v0 }
 0x2a2   : > { %v2111_v2 = vpop.f32.mrb[32].mxu0 }
 0x2a3   : > { %v1086_v3 = vadd.f32 %v2111_v2, %v2635_v1  ;;  %v1080_v4 = vpop.f32.mrb[33].mxu0 }
 0x2a4   : > { %v1081_v5 = vadd.f32 %v2635_v1, %v1080_v4 }
 0x2a5   : > { %v1240_v8 = vmax.f32 %v1086_v3, 0.0 }
 0x2a6   : > { %v1239_v6 = vmax.f32 %v1081_v5, 0.0  ;;  %v2114_v7 = vpop.f32.mrb[34].mxu0 }
 0x2a7   : > { %v1096_v9 = vadd.f32 %v2114_v7, %v2635_v1  ;;  %v1090_v10 = vpop.f32.mrb[35].mxu0 }
 0x2a8   : > { %v1091_v11 = vadd.f32 %v2635_v1, %v1090_v10  ;;  %2165 = vmatprep.mubr.msk.f32.mxu0 %vm188_vm0, %v1239_v6 }
 0x2a9   : > { %2166 = vmatmul.mubr.msk.f32.vlgmr.msra.gmra.mrb[64].mxu0 %vm188_vm0, %v1240_v8  ;;  %v1242_v14 = vmax.f32 %v1096_v9, 0.0 }
 0x2aa   : > { %v1241_v12 = vmax.f32 %v1091_v11, 0.0  ;;  %v2117_v13 = vpop.f32.mrb[36].mxu0 }
 0x2ab   : > { %v1106_v15 = vadd.f32 %v2117_v13, %v2635_v1  ;;  %v1100_v16 = vpop.f32.mrb[37].mxu0 }
 0x2ac   : > { %v1101_v17 = vadd.f32 %v2635_v1, %v1100_v16  ;;  %2168 = vmatprep.mubr.msk.f32.mxu1 %vm188_vm0, %v1241_v12 }
 0x2ad   : > { %2169 = vmatmul.mubr.msk.f32.vlgmr.msra.gmra.mrb[32].mxu1 %vm188_vm0, %v1242_v14  ;;  %v1244_v20 = vmax.f32 %v1106_v15, 0.0 }
 0x2ae   : > { %v1243_v18 = vmax.f32 %v1101_v17, 0.0  ;;  %v2120_v19 = vpop.f32.mrb[38].mxu0 }
 0x2af   : > { %v1116_v21 = vadd.f32 %v2120_v19, %v2635_v1  ;;  %v1110_v22 = vpop.f32.mrb[39].mxu0 }
 0x2b0   : > { %v1111_v23 = vadd.f32 %v2635_v1, %v1110_v22  ;;  %2171 = vmatprep.mubr.msk.f32.mxu1 %vm188_vm0, %v1243_v18 }
 0x2b1   : > { %2172 = vmatmul.mubr.msk.f32.gmra.mrb[34].mxu1 %vm188_vm0, %v1244_v20  ;;  %v1246_v26 = vmax.f32 %v1116_v21, 0.0 }
 0x2b2   : > { %v1245_v24 = vmax.f32 %v1111_v23, 0.0  ;;  %v2123_v25 = vpop.f32.mrb[40].mxu0 }
 0x2b3   : > { %v1126_v27 = vadd.f32 %v2123_v25, %v2635_v1  ;;  %v1120_v56 = vpop.f32.mrb[41].mxu0 }
 0x2b4   : > { %v1121_v28 = vadd.f32 %v2635_v1, %v1120_v56  ;;  %2174 = vmatprep.mubr.msk.f32.mxu1 %vm188_vm0, %v1245_v24 }
 0x2b5   : > { %2175 = vmatmul.mubr.msk.f32.gmra.mrb[36].mxu1 %vm188_vm0, %v1246_v26  ;;  %v1248_v32 = vmax.f32 %v1126_v27, 0.0 }
 0x2b6   : > { %v1247_v29 = vmax.f32 %v1121_v28, 0.0  ;;  %v2126_v30 = vpop.f32.mrb[42].mxu0 }
 0x2b7   : > { %v1136_v33 = vadd.f32 %v2126_v30, %v2635_v1  ;;  %v1130_v34 = vpop.f32.mrb[43].mxu0 }
 0x2b8   : > { %v1131_v35 = vadd.f32 %v2635_v1, %v1130_v34  ;;  %2177 = vmatprep.mubr.msk.f32.mxu1 %vm188_vm0, %v1247_v29 }
 0x2b9   : > { %2178 = vmatmul.mubr.msk.f32.gmra.mrb[38].mxu1 %vm188_vm0, %v1248_v32  ;;  %v1250_v38 = vmax.f32 %v1136_v33, 0.0 }
 0x2ba   : > { %v1249_v36 = vmax.f32 %v1131_v35, 0.0  ;;  %v2129_v37 = vpop.f32.mrb[44].mxu0  ;;  %v2704_v35 = vld [vmem:[%s2813_s1 + $0xb8] ss:$0 sm:$0xff] }
 0x2bb   : > { %v1146_v39 = vadd.f32 %v2129_v37, %v2635_v1  ;;  %v1140_v40 = vpop.f32.mrb[45].mxu0 }
 0x2bc   : > { %v1141_v41 = vadd.f32 %v2635_v1, %v1140_v40  ;;  %2180 = vmatprep.mubr.msk.f32.mxu1 %vm188_vm0, %v1249_v36 }
 0x2bd   : > { %2181 = vmatmul.mubr.msk.f32.gmra.mrb[40].mxu1 %vm188_vm0, %v1250_v38  ;;  %v1252_v44 = vmax.f32 %v1146_v39, 0.0 }
 0x2be   : > { %v1251_v42 = vmax.f32 %v1141_v41, 0.0  ;;  %v2132_v43 = vpop.f32.mrb[46].mxu0 }
 0x2bf   : > { %v1156_v45 = vadd.f32 %v2132_v43, %v2635_v1  ;;  %v1150_v46 = vpop.f32.mrb[47].mxu0 }
 0x2c0   : > { %v1151_v47 = vadd.f32 %v2635_v1, %v1150_v46  ;;  %2183 = vmatprep.mubr.msk.f32.mxu1 %vm188_vm0, %v1251_v42 }
 0x2c1   : > { %2184 = vmatmul.mubr.msk.f32.gmra.mrb[42].mxu1 %vm188_vm0, %v1252_v44  ;;  %v1254_v50 = vmax.f32 %v1156_v45, 0.0 }
 0x2c2   : > { %v1253_v48 = vmax.f32 %v1151_v47, 0.0  ;;  %v2135_v49 = vpop.f32.mrb[48].mxu0 }
 0x2c3   : > { %v1166_v51 = vadd.f32 %v2135_v49, %v2635_v1  ;;  %v1160_v52 = vpop.f32.mrb[49].mxu0 }
 0x2c4   : > { %v1161_v53 = vadd.f32 %v2635_v1, %v1160_v52  ;;  %2186 = vmatprep.mubr.msk.f32.mxu1 %vm188_vm0, %v1253_v48 }
 0x2c5   : > { %2187 = vmatmul.mubr.msk.f32.gmra.mrb[44].mxu1 %vm188_vm0, %v1254_v50  ;;  %v1256_v57 = vmax.f32 %v1166_v51, 0.0 }
 0x2c6   : > { %v1255_v54 = vmax.f32 %v1161_v53, 0.0  ;;  %v2138_v55 = vpop.f32.mrb[50].mxu0 }
 0x2c7   : > { %v1176_v58 = vadd.f32 %v2138_v55, %v2635_v1  ;;  %v1170_v59 = vpop.f32.mrb[51].mxu0 }
 0x2c8   : > { %v1171_v60 = vadd.f32 %v2635_v1, %v1170_v59  ;;  %2189 = vmatprep.mubr.msk.f32.mxu1 %vm188_vm0, %v1255_v54 }
 0x2c9   : > { %2190 = vmatmul.mubr.msk.f32.gmra.mrb[46].mxu1 %vm188_vm0, %v1256_v57  ;;  %v1258_v63 = vmax.f32 %v1176_v58, 0.0 }
 0x2ca   : > { %v1257_v61 = vmax.f32 %v1171_v60, 0.0  ;;  %v2141_v62 = vpop.f32.mrb[52].mxu0 }
 0x2cb   : > { %v1186_v31 = vadd.f32 %v2141_v62, %v2635_v1  ;;  %v1180_v0 = vpop.f32.mrb[53].mxu0 }
 0x2cc   : > { %v1181_v2 = vadd.f32 %v2635_v1, %v1180_v0  ;;  %2192 = vmatprep.mubr.msk.f32.mxu1 %vm188_vm0, %v1257_v61 }
 0x2cd   : > { %2193 = vmatmul.mubr.msk.f32.gmra.mrb[48].mxu1 %vm188_vm0, %v1258_v63  ;;  %v1260_v5 = vmax.f32 %v1186_v31, 0.0 }
 0x2ce   : > { %v1259_v3 = vmax.f32 %v1181_v2, 0.0  ;;  %v2144_v4 = vpop.f32.mrb[54].mxu0 }
 0x2cf   : > { %v1196_v6 = vadd.f32 %v2144_v4, %v2635_v1  ;;  %v1190_v7 = vpop.f32.mrb[55].mxu0 }
 0x2d0   : > { %v1191_v8 = vadd.f32 %v2635_v1, %v1190_v7  ;;  %2195 = vmatprep.mubr.msk.f32.mxu1 %vm188_vm0, %v1259_v3 }
 0x2d1   : > { %2196 = vmatmul.mubr.msk.f32.gmra.mrb[50].mxu1 %vm188_vm0, %v1260_v5  ;;  %v1262_v11 = vmax.f32 %v1196_v6, 0.0 }
 0x2d2   : > { %v1261_v9 = vmax.f32 %v1191_v8, 0.0  ;;  %v2147_v10 = vpop.f32.mrb[56].mxu0 }
 0x2d3   : > { %v1206_v12 = vadd.f32 %v2147_v10, %v2635_v1  ;;  %v1200_v13 = vpop.f32.mrb[57].mxu0 }
 0x2d4   : > { %v1201_v14 = vadd.f32 %v2635_v1, %v1200_v13  ;;  %2198 = vmatprep.mubr.msk.f32.mxu1 %vm188_vm0, %v1261_v9 }
 0x2d5   : > { %2199 = vmatmul.mubr.msk.f32.gmra.mrb[52].mxu1 %vm188_vm0, %v1262_v11  ;;  %v1264_v17 = vmax.f32 %v1206_v12, 0.0 }
 0x2d6   : > { %v1263_v15 = vmax.f32 %v1201_v14, 0.0  ;;  %v2150_v16 = vpop.f32.mrb[58].mxu0 }
 0x2d7   : > { %v1216_v18 = vadd.f32 %v2150_v16, %v2635_v1  ;;  %v1210_v19 = vpop.f32.mrb[59].mxu0 }
 0x2d8   : > { %v1211_v20 = vadd.f32 %v2635_v1, %v1210_v19  ;;  %2201 = vmatprep.mubr.msk.f32.mxu1 %vm188_vm0, %v1263_v15 }
 0x2d9   : > { %2202 = vmatmul.mubr.msk.f32.gmra.mrb[54].mxu1 %vm188_vm0, %v1264_v17  ;;  %v1266_v23 = vmax.f32 %v1216_v18, 0.0 }
 0x2da   : > { %v1265_v21 = vmax.f32 %v1211_v20, 0.0  ;;  %v2153_v22 = vpop.f32.mrb[60].mxu0 }
 0x2db   : > { %v1226_v24 = vadd.f32 %v2153_v22, %v2635_v1  ;;  %v1220_v25 = vpop.f32.mrb[61].mxu0 }
 0x2dc   : > { %v1221_v26 = vadd.f32 %v2635_v1, %v1220_v25  ;;  %2204 = vmatprep.mubr.msk.f32.mxu1 %vm188_vm0, %v1265_v21 }
 0x2dd   : > { %2205 = vmatmul.mubr.msk.f32.gmra.mrb[56].mxu1 %vm188_vm0, %v1266_v23  ;;  %v1268_v28 = vmax.f32 %v1226_v24, 0.0 }
 0x2de   : > { %v1267_v27 = vmax.f32 %v1221_v26, 0.0  ;;  %v2156_v56 = vpop.f32.mrb[62].mxu0 }
 0x2df   : > { %v1236_v29 = vadd.f32 %v2156_v56, %v2635_v1  ;;  %v1230_v30 = vpop.f32.mrb[63].mxu0 }
 0x2e0   : > { %v1231_v32 = vadd.f32 %v2635_v1, %v1230_v30  ;;  %2207 = vmatprep.mubr.msk.f32.mxu1 %vm188_vm0, %v1267_v27 }
 0x2e1   : > { %2208 = vmatmul.mubr.msk.f32.gmra.mrb[58].mxu1 %vm188_vm0, %v1268_v28  ;;  %v1270_v34 = vmax.f32 %v1236_v29, 0.0 }
 0x2e2   : > { %v1269_v33 = vmax.f32 %v1231_v32, 0.0 }
 0x2e4   : > { %2210 = vmatprep.mubr.msk.f32.mxu1 %vm188_vm0, %v1269_v33 }
 0x2e5   : > { %2211 = vmatmul.mubr.msk.f32.gmra.mrb[60].mxu1 %vm188_vm0, %v1270_v34 }
 0x37c   : > { %v2167_v1 = vpop.f32.mrb[64].mxu0 }
 0x37d   : > { %v1448_v36 = vadd.f32 %v2167_v1, %v2704_v35  ;;  %v1442_v37 = vpop.f32.mrb[65].mxu0 }
 0x37e   : > { %v1443_v38 = vadd.f32 %v2704_v35, %v1442_v37 }
 0x37f   : > { %1603 = vst.msk [vmem:[%s2711_s14 + $0x8] sm:$0xff] %vm1601_vm2, %v1448_v36 }
 0x380   : > { %1602 = vst.msk [vmem:[%s2711_s14] sm:$0xff] %vm1601_vm2, %v1443_v38  ;;  %v2170_v39 = vpop.f32.mrb[32].mxu1 }
 0x381   : > { %v1458_v40 = vadd.f32 %v2170_v39, %v2704_v35  ;;  %v1452_v41 = vpop.f32.mrb[33].mxu1 }
 0x382   : > { %v1453_v42 = vadd.f32 %v2704_v35, %v1452_v41 }
 0x383   : > { %1605 = vst.msk [vmem:[%s2711_s14 + $0x18] sm:$0xff] %vm1601_vm2, %v1458_v40 }
 0x384   : > { %1604 = vst.msk [vmem:[%s2711_s14 + $0x10] sm:$0xff] %vm1601_vm2, %v1453_v42  ;;  %v2173_v43 = vpop.f32.mrb[34].mxu1 }
 0x385   : > { %v1468_v44 = vadd.f32 %v2173_v43, %v2704_v35  ;;  %v1462_v45 = vpop.f32.mrb[35].mxu1 }
 0x386   : > { %v1463_v46 = vadd.f32 %v2704_v35, %v1462_v45 }
 0x387   : > { %1607 = vst.msk [vmem:[%s2711_s14 + $0x28] sm:$0xff] %vm1601_vm2, %v1468_v44 }
 0x388   : > { %1606 = vst.msk [vmem:[%s2711_s14 + $0x20] sm:$0xff] %vm1601_vm2, %v1463_v46  ;;  %v2176_v47 = vpop.f32.mrb[36].mxu1 }
 0x389   : > { %v1478_v48 = vadd.f32 %v2176_v47, %v2704_v35  ;;  %v1472_v49 = vpop.f32.mrb[37].mxu1 }
 0x38a   : > { %v1473_v50 = vadd.f32 %v2704_v35, %v1472_v49 }
 0x38b   : > { %1609 = vst.msk [vmem:[%s2711_s14 + $0x38] sm:$0xff] %vm1601_vm2, %v1478_v48 }
 0x38c   : > { %1608 = vst.msk [vmem:[%s2711_s14 + $0x30] sm:$0xff] %vm1601_vm2, %v1473_v50  ;;  %v2179_v51 = vpop.f32.mrb[38].mxu1 }
 0x38d   : > { %v1488_v52 = vadd.f32 %v2179_v51, %v2704_v35  ;;  %v1482_v53 = vpop.f32.mrb[39].mxu1 }
 0x38e   : > { %v1483_v54 = vadd.f32 %v2704_v35, %v1482_v53 }
 0x38f   : > { %1611 = vst.msk [vmem:[%s2711_s14 + $0x48] sm:$0xff] %vm1601_vm2, %v1488_v52 }
 0x390   : > { %1610 = vst.msk [vmem:[%s2711_s14 + $0x40] sm:$0xff] %vm1601_vm2, %v1483_v54  ;;  %v2182_v55 = vpop.f32.mrb[40].mxu1 }
 0x391   : > { %v1498_v57 = vadd.f32 %v2182_v55, %v2704_v35  ;;  %v1492_v58 = vpop.f32.mrb[41].mxu1 }
 0x392   : > { %v1493_v59 = vadd.f32 %v2704_v35, %v1492_v58 }
 0x393   : > { %1613 = vst.msk [vmem:[%s2711_s14 + $0x58] sm:$0xff] %vm1601_vm2, %v1498_v57 }
 0x394   : > { %1612 = vst.msk [vmem:[%s2711_s14 + $0x50] sm:$0xff] %vm1601_vm2, %v1493_v59  ;;  %v2185_v60 = vpop.f32.mrb[42].mxu1 }
 0x395   : > { %v1508_v61 = vadd.f32 %v2185_v60, %v2704_v35  ;;  %v1502_v62 = vpop.f32.mrb[43].mxu1 }
 0x396   : > { %v1503_v63 = vadd.f32 %v2704_v35, %v1502_v62 }
 0x397   : > { %1615 = vst.msk [vmem:[%s2711_s14 + $0x68] sm:$0xff] %vm1601_vm2, %v1508_v61 }
 0x398   : > { %1614 = vst.msk [vmem:[%s2711_s14 + $0x60] sm:$0xff] %vm1601_vm2, %v1503_v63  ;;  %v2188_v31 = vpop.f32.mrb[44].mxu1 }
 0x399   : > { %v1518_v0 = vadd.f32 %v2188_v31, %v2704_v35  ;;  %v1512_v2 = vpop.f32.mrb[45].mxu1 }
 0x39a   : > { %v1513_v3 = vadd.f32 %v2704_v35, %v1512_v2 }
 0x39b   : > { %1617 = vst.msk [vmem:[%s2711_s14 + $0x78] sm:$0xff] %vm1601_vm2, %v1518_v0 }
 0x39c   : > { %1616 = vst.msk [vmem:[%s2711_s14 + $0x70] sm:$0xff] %vm1601_vm2, %v1513_v3  ;;  %v2191_v4 = vpop.f32.mrb[46].mxu1 }
 0x39d   : > { %v1528_v5 = vadd.f32 %v2191_v4, %v2704_v35  ;;  %v1522_v6 = vpop.f32.mrb[47].mxu1 }
 0x39e   : > { %v1523_v7 = vadd.f32 %v2704_v35, %v1522_v6 }
 0x39f   : > { %1619 = vst.msk [vmem:[%s2711_s14 + $0x88] sm:$0xff] %vm1601_vm2, %v1528_v5 }
 0x3a0   : > { %1618 = vst.msk [vmem:[%s2711_s14 + $0x80] sm:$0xff] %vm1601_vm2, %v1523_v7  ;;  %v2194_v8 = vpop.f32.mrb[48].mxu1 }
 0x3a1   : > { %v1538_v9 = vadd.f32 %v2194_v8, %v2704_v35  ;;  %v1532_v10 = vpop.f32.mrb[49].mxu1 }
 0x3a2   : > { %v1533_v11 = vadd.f32 %v2704_v35, %v1532_v10 }
 0x3a3   : > { %1621 = vst.msk [vmem:[%s2711_s14 + $0x98] sm:$0xff] %vm1601_vm2, %v1538_v9 }
 0x3a4   : > { %1620 = vst.msk [vmem:[%s2711_s14 + $0x90] sm:$0xff] %vm1601_vm2, %v1533_v11  ;;  %v2197_v12 = vpop.f32.mrb[50].mxu1 }
 0x3a5   : > { %v1548_v13 = vadd.f32 %v2197_v12, %v2704_v35  ;;  %v1542_v14 = vpop.f32.mrb[51].mxu1 }
 0x3a6   : > { %v1543_v15 = vadd.f32 %v2704_v35, %v1542_v14 }
 0x3a7   : > { %1623 = vst.msk [vmem:[%s2711_s14 + $0xa8] sm:$0xff] %vm1601_vm2, %v1548_v13 }
 0x3a8   : > { %1622 = vst.msk [vmem:[%s2711_s14 + $0xa0] sm:$0xff] %vm1601_vm2, %v1543_v15  ;;  %v2200_v16 = vpop.f32.mrb[52].mxu1 }
 0x3a9   : > { %v1558_v17 = vadd.f32 %v2200_v16, %v2704_v35  ;;  %v1552_v18 = vpop.f32.mrb[53].mxu1 }
 0x3aa   : > { %v1553_v19 = vadd.f32 %v2704_v35, %v1552_v18 }
 0x3ab   : > { %1625 = vst.msk [vmem:[%s2711_s14 + $0xb8] sm:$0xff] %vm1601_vm2, %v1558_v17 }
 0x3ac   : > { %1624 = vst.msk [vmem:[%s2711_s14 + $0xb0] sm:$0xff] %vm1601_vm2, %v1553_v19  ;;  %v2203_v20 = vpop.f32.mrb[54].mxu1 }
 0x3ad   : > { %v1568_v21 = vadd.f32 %v2203_v20, %v2704_v35  ;;  %v1562_v22 = vpop.f32.mrb[55].mxu1 }
 0x3ae   : > { %v1563_v23 = vadd.f32 %v2704_v35, %v1562_v22 }
 0x3af   : > { %1627 = vst.msk [vmem:[%s2711_s14 + $0xc8] sm:$0xff] %vm1601_vm2, %v1568_v21 }
 0x3b0   : > { %1626 = vst.msk [vmem:[%s2711_s14 + $0xc0] sm:$0xff] %vm1601_vm2, %v1563_v23  ;;  %v2206_v24 = vpop.f32.mrb[56].mxu1 }
 0x3b1   : > { %v1578_v25 = vadd.f32 %v2206_v24, %v2704_v35  ;;  %v1572_v26 = vpop.f32.mrb[57].mxu1 }
 0x3b2   : > { %v1573_v27 = vadd.f32 %v2704_v35, %v1572_v26 }
 0x3b3   : > { %1629 = vst.msk [vmem:[%s2711_s14 + $0xd8] sm:$0xff] %vm1601_vm2, %v1578_v25 }
 0x3b4   : > { %1628 = vst.msk [vmem:[%s2711_s14 + $0xd0] sm:$0xff] %vm1601_vm2, %v1573_v27  ;;  %v2209_v56 = vpop.f32.mrb[58].mxu1 }
 0x3b5   : > { %v1588_v28 = vadd.f32 %v2209_v56, %v2704_v35  ;;  %v1582_v29 = vpop.f32.mrb[59].mxu1 }
 0x3b6   : > { %v1583_v30 = vadd.f32 %v2704_v35, %v1582_v29 }
 0x3b7   : > { %1631 = vst.msk [vmem:[%s2711_s14 + $0xe8] sm:$0xff] %vm1601_vm2, %v1588_v28 }
 0x3b8   : > { %1630 = vst.msk [vmem:[%s2711_s14 + $0xe0] sm:$0xff] %vm1601_vm2, %v1583_v30  ;;  %v2212_v32 = vpop.f32.mrb[60].mxu1 }
 0x3b9   : > { %v1598_v33 = vadd.f32 %v2212_v32, %v2704_v35  ;;  %v1592_v34 = vpop.f32.mrb[61].mxu1 }
 0x3ba   : > { %v1593_v1 = vadd.f32 %v2704_v35, %v1592_v34 }
 0x3bb   : > { %1633 = vst.msk [vmem:[%s2711_s14 + $0xf8] sm:$0xff] %vm1601_vm2, %v1598_v33 }
 0x3bc   : > { %1632 = vst.msk [vmem:[%s2711_s14 + $0xf0] sm:$0xff] %vm1601_vm2, %v1593_v1 }
 0x3bd PF: > { %s12_s9 = sadd.s32 1, %s2335_s9  }
 0x3be   : > { %p9_p4 = scmp.ge.s32.totalorder %s12_s9, 6  }
 0x3c0   :  { %11 = sbr.rel (!%p9_p4) target bundleno = 1 (0x1), region = 58 }

</bundles_post_ra>
